<compile_context>
chip_gen: v7x
topology: tpu7x:2x2x1
jax: 0.10.0
libtpu: 0.0.40
codegen_flags: <defaults>
</compile_context>

<pallas_src>
import functools
import math

import jax
import jax.numpy as jnp
from jax import lax
from jax.experimental import pallas as pl
from jax.experimental.pallas import tpu as pltpu


# ------------------------------------------------------------------ kernel ---
def nextvlad_kernel(x_ref, w0_ref, b0_ref, wc_ref, bc_ref, cw2_ref,
                    sum_ind_ref, bcast_ind_ref, bn0_ref, bn1_ref, out_ref,
                    *, TB, M, G, K, GS, GK):
    """One grid step processes TB batch elements (TB*M frame rows).

    x_ref        : (TB*M, N)   f32 input frames (batch*frames collapsed)
    w0_ref       : (N, D)      bf16 fc0 weight (D = lamb * N)
    b0_ref       : (1, D)      f32 fc0 bias
    wc_ref       : (D, GK+G)   bf16 fused [fc_gk | fc_g] weight
    bc_ref       : (1, GK+G)   f32 fused bias
    cw2_ref      : (GS, K)     cluster_weights2 (squeezed leading 1)
    sum_ind_ref  : (GK, G)     bf16 0/1 group-sum indicator
    bcast_ind_ref: (G, GK)     bf16 0/1 group-broadcast indicator
    bn0_ref      : (TB*M, 2)   folded eval-mode bn0: col0=scale, col1=shift
    bn1_ref      : (2,) SMEM   folded eval-mode bn1 scalars [scale, shift]
    out_ref      : (TB, GS, K) un-flattened vlad output
    """
    f32 = jnp.float32
    bf16 = jnp.bfloat16

    # In-kernel bf16 cast (input arrives as f32; cast is hidden under MXU time).
    x = x_ref[...].astype(bf16)                                      # (TBM, N)

    # ---- fc0 : one full-width MXU matmul over all TB*M rows (bf16 in, f32 acc)
    x_dot = jnp.dot(x, w0_ref[...], preferred_element_type=f32) + b0_ref[...]
    xd_bf = x_dot.astype(bf16)                                       # reused below
    D = x_dot.shape[-1]

    # ---- fused fc_gk | fc_g : single (TB*M, D) @ (D, GK+G) matmul
    c = jnp.dot(xd_bf, wc_ref[...], preferred_element_type=f32) + bc_ref[...]
    # bn0 (eval mode): per-frame affine on the fc_gk part only
    wgkx = c[:, :GK] * bn0_ref[:, 0:1] + bn0_ref[:, 1:2]             # (TBM, GK)
    alpha_g = jax.nn.sigmoid(c[:, GK:GK + G])                        # (TBM, G)

    # ---- grouped softmax over K with an exact per-group max.
    # Per-group max: G masked full-width lane reductions (XLU slot, free under
    # an MXU-bound kernel).  The broadcast back to GK lanes goes through a tiny
    # bf16 0/1 indicator matmul (exact: one product per output, f32 acc), so
    # the subtracted shift is constant within each group -> softmax is exact.
    # TODO(synk): when K % 128 == 0 (production K=128) a (TBM, G, K) lane-tile
    # aligned reshape + axis=-1 max/sum is the cheaper path.
    bcast_ind = bcast_ind_ref[...]                                   # (G, GK) bf16
    gmax_cols = []
    for g in range(G):
        row = bcast_ind[g:g + 1, :]                                  # (1, GK)
        masked = jnp.where(row > 0, wgkx, jnp.float32(-1e30))
        gmax_cols.append(jnp.max(masked, axis=-1, keepdims=True))    # (TBM, 1)
    gmax = jnp.concatenate(gmax_cols, axis=-1)                       # (TBM, G)
    gmax_b = jnp.dot(gmax.astype(bf16), bcast_ind,
                     preferred_element_type=f32)                     # (TBM, GK)

    e = jnp.exp(wgkx - gmax_b)                                       # (TBM, GK) f32
    # Group sums & per-group broadcast as bf16 indicator matmuls (MXU, ~3x
    # cheaper than f32 passes); division is exact (tiny arrays).
    ssum = jnp.dot(e.astype(bf16), sum_ind_ref[...],
                   preferred_element_type=f32)                       # (TBM, G)
    sg = alpha_g / ssum                                              # (TBM, G)
    scale = jnp.dot(sg.astype(bf16), bcast_ind,
                    preferred_element_type=f32)                      # (TBM, GK)
    act = e * scale
    #   act[r, g*K+k] == softmax_K(wgkx)[r, g, k] * alpha_g[r, g]
    act_bf = act.astype(bf16)

    # ---- per-batch VLAD aggregation.
    # Split the row dim back into (TB, M); the wrapper guarantees either TB==1
    # or M % 8 == 0 so this is a cheap sublane split, not a full relayout.
    xd3 = xd_bf.reshape(TB, M, D)                                    # (TB, M, D)
    act3 = act_bf.reshape(TB, M, GK)                                 # (TB, M, GK)
    # a_sum from the same bf16 activations used for vlad (consistent precision)
    asum_gk = jnp.sum(act3.astype(f32), axis=1)                      # (TB, GK)

    vlad = jnp.zeros((TB, GS, K), f32)
    a_sum = jnp.zeros((TB, K), f32)
    # G is small & static; each step issues one TB-batched MXU contraction
    # over the frame axis M.
    for g in range(G):
        xt = xd3[:, :, g * GS:(g + 1) * GS]                          # (TB, M, GS)
        ag = act3[:, :, g * K:(g + 1) * K]                           # (TB, M, K)
        # vlad[b, gs, k] += sum_m xt[b, m, gs] * ag[b, m, k]
        vlad = vlad + lax.dot_general(
            xt, ag, (((1,), (1,)), ((0,), (0,))),
            preferred_element_type=f32)                              # (TB, GS, K)
        a_sum = a_sum + asum_gk[:, g * K:(g + 1) * K]                # (TB, K)

    a = a_sum[:, None, :] * cw2_ref[...][None, :, :]                 # (TB, GS, K)
    v = vlad - a

    # F.normalize(vlad, p=1, dim=1): L1 over the group_size axis, eps=1e-12
    denom = jnp.maximum(jnp.sum(jnp.abs(v), axis=1, keepdims=True), 1e-12)
    v = v / denom

    # bn1 (eval mode, single channel -> scalar affine), scalars from SMEM
    v = v * bn1_ref[0] + bn1_ref[1]

    # TODO(synk): small-K deployments (K < 128) pay masked partial stores here;
    # production K=128 is lane-dense.
    out_ref[...] = v.astype(out_ref.dtype)


# ----------------------------------------------------------------- wrapper ---
def nextvlad_forward(x, params, *, G, K, TB=None):
    (W0, b0, Wgk, bgk, Wg, bg, cw2, scale0, shift0, s1, t1) = params
    B, M, N = x.shape
    D = W0.shape[1]
    GS = cw2.shape[0]
    GK = G * K
    assert G * GS == D and Wgk.shape[1] == GK

    def vmem_bytes(tb):
        rows = tb * M
        w = 2 * (N * D + D * (GK + G) + 2 * GK * G)          # bf16 weights + indicators
        w += 4 * (D + (GK + G) + GS * K) + 8 * rows          # f32 biases, cw2, bn0 affine
        io = 2 * rows * N * 4 + 2 * tb * GS * K * 4          # double-buffered x + out
        interm = rows * (6 * D + 4 * (GK + G) + 14 * GK) + 12 * tb * GS * K
        return w + io + interm

    # Batch tiling: target ~512 rows per step (amortize ~0.35us step overhead),
    # cap the working set (v7x has only 64 MiB physical VMEM), and keep >= 2
    # grid steps when possible so both v7x TensorCores get a 'parallel' slice.
    if TB is None:
        if M % 8 != 0:
            TB = 1   # keep the (TB*M,.)->(TB,M,.) split a trivial unit-dim insert
        else:
            TB = max(1, min(B, max(1, 512 // M)))
            if B > 1 and pl.cdiv(B, TB) < 2:
                TB = pl.cdiv(B, 2)
        while TB > 1 and vmem_bytes(TB) > 40 * (1 << 20):
            TB = max(1, TB // 2)
    n_tiles = pl.cdiv(B, TB)
    Bp = n_tiles * TB

    # Collapse (B, M) -> rows (f32; the bf16 cast happens inside the kernel).
    x2 = x.reshape(B * M, N).astype(jnp.float32)
    if Bp != B:
        x2 = jnp.concatenate(
            [x2, jnp.zeros(((Bp - B) * M, N), x2.dtype)], axis=0)

    # bf16 MXU operands (f32 accumulation in-kernel); fuse fc_gk | fc_g.
    W0b = W0.astype(jnp.bfloat16)
    Wc = jnp.concatenate([Wgk, Wg], axis=1).astype(jnp.bfloat16)     # (D, GK+G)
    bc = jnp.concatenate([bgk, bg], axis=1).astype(jnp.float32)      # (1, GK+G)

    # Precomputed 0/1 group indicators (hoisted iota/compare), bf16 operands.
    grp = jnp.arange(GK, dtype=jnp.int32) // K
    gid = jnp.arange(G, dtype=jnp.int32)
    sum_ind = (grp[:, None] == gid[None, :]).astype(jnp.bfloat16)    # (GK, G)
    bcast_ind = (gid[:, None] == grp[None, :]).astype(jnp.bfloat16)  # (G, GK)

    # bn0 folded per-frame affine, pre-tiled to the TB*M rows of one grid step.
    bn0_aff = jnp.tile(jnp.concatenate([scale0, shift0], axis=1),
                       (TB, 1)).astype(jnp.float32)                  # (TB*M, 2)
    # bn1 folded scalar affine -> SMEM
    bn1_aff = jnp.concatenate([s1.reshape(-1), t1.reshape(-1)]
                              ).astype(jnp.float32)                  # (2,)

    kernel = functools.partial(nextvlad_kernel, TB=TB, M=M, G=G, K=K,
                               GS=GS, GK=GK)

    def const_spec(*shape):
        # Grid-invariant operand: single buffer (the default second buffer
        # would be pure VMEM waste for a constant index map).
        return pl.BlockSpec(shape, lambda i: tuple(0 for _ in shape),
                            pipeline_mode=pl.Buffered(1))

    # Explicit scoped-VMEM budget: 2x the estimated footprint, floor 32 MiB,
    # capped at 48 MiB (leaves headroom inside v7x's 64 MiB physical VMEM and
    # is well within v5e/v6e's 128 MiB).
    vmem_limit = int(min(48 * (1 << 20),
                         max(32 * (1 << 20), 2 * vmem_bytes(TB))))

    out = pl.pallas_call(
        kernel,
        out_shape=jax.ShapeDtypeStruct((Bp, GS, K), jnp.float32),
        grid=(n_tiles,),
        in_specs=[
            pl.BlockSpec((TB * M, N), lambda i: (i, 0)),     # x (collapsed rows)
            const_spec(N, D),                                # W0          (bf16)
            const_spec(1, D),                                # b0
            const_spec(D, GK + G),                           # [Wgk|Wg]    (bf16)
            const_spec(1, GK + G),                           # [bgk|bg]
            const_spec(GS, K),                               # cluster_weights2
            const_spec(GK, G),                               # sum indicator (bf16)
            const_spec(G, GK),                               # bcast indicator (bf16)
            const_spec(TB * M, 2),                           # bn0 scale/shift
            pl.BlockSpec(memory_space=pltpu.MemorySpace.SMEM),  # bn1 scalars
        ],
        out_specs=pl.BlockSpec((TB, GS, K), lambda i: (i, 0, 0)),
        compiler_params=pltpu.CompilerParams(
            dimension_semantics=("parallel",),
            vmem_limit_bytes=vmem_limit),
    )(x2, W0b, b0, Wc, bc, cw2, sum_ind, bcast_ind, bn0_aff, bn1_aff)

    # Flatten (B, GS, K) -> (B, K*GS) row-major (same order as torch .reshape).
    return out[:B].reshape(B, GS * K)


# --------------------------------------------------------------- reference ---
def nextvlad_ref(x, params, *, G, K):
    (W0, b0, Wgk, bgk, Wg, bg, cw2, scale0, shift0, s1, t1) = params
    B, M, N = x.shape
    GS = cw2.shape[0]
    hp = lax.Precision.HIGHEST

    x_dot = jnp.einsum("bmn,nd->bmd", x, W0, precision=hp) + b0
    x_tilde = x_dot.reshape(B, M, G, GS)
    wgkx = jnp.einsum("bmd,dk->bmk", x_dot, Wgk, precision=hp) + bgk
    wgkx = wgkx * scale0.reshape(1, M, 1) + shift0.reshape(1, M, 1)
    wgkx = wgkx.reshape(B, M * G, K)
    alpha_gk = jax.nn.softmax(wgkx, axis=-1)
    alpha_g = jax.nn.sigmoid(
        jnp.einsum("bmd,dg->bmg", x_dot, Wg, precision=hp) + bg)
    alpha_g = alpha_g.reshape(B, M * G, 1)
    act = alpha_gk * alpha_g
    a_sum = jnp.sum(act, axis=-2, keepdims=True)
    a = a_sum * cw2[None]
    act_t = jnp.transpose(act, (0, 2, 1))
    rxt = x_tilde.reshape(B, M * G, GS)
    vlad = jnp.einsum("bkm,bmg->bkg", act_t, rxt, precision=hp)
    vlad = jnp.transpose(vlad, (0, 2, 1)) - a
    denom = jnp.maximum(jnp.sum(jnp.abs(vlad), axis=1, keepdims=True), 1e-12)
    vlad = vlad / denom
    vlad = vlad.reshape(B, 1, K * GS) * s1[0, 0] + t1[0, 0]
    return vlad.reshape(B, K * GS)


# ------------------------------------------------------------------- main ---
if __name__ == "__main__":
    # Module config (small): feature_size=64, max_frames=8, K=16, lamb=2, G=8
    B, M, N = 2, 8, 64
    lamb, G, K = 2, 8, 16
    D = lamb * N
    GS = lamb * N // G               # group_size = 16

    key = jax.random.PRNGKey(0)
    ks = jax.random.split(key, 8)

    bnd0 = 1.0 / math.sqrt(N)
    bndd = 1.0 / math.sqrt(D)
    W0 = jax.random.uniform(ks[0], (N, D), jnp.float32, -bnd0, bnd0)
    b0 = jax.random.uniform(ks[1], (1, D), jnp.float32, -bnd0, bnd0)
    Wgk = jax.random.uniform(ks[2], (D, G * K), jnp.float32, -bndd, bndd)
    bgk = jax.random.uniform(ks[3], (1, G * K), jnp.float32, -bndd, bndd)
    Wg = jax.random.uniform(ks[4], (D, G), jnp.float32, -bndd, bndd)
    bg = jax.random.uniform(ks[5], (1, G), jnp.float32, -bndd, bndd)
    cw2 = jax.random.uniform(ks[6], (GS, K), jnp.float32, 0.0, 1.0)

    # eval-mode BatchNorm folded params (default-initialized running stats)
    eps = 1e-5
    scale0 = (jnp.ones((M,)) / jnp.sqrt(jnp.ones((M,)) + eps)).reshape(M, 1)
    shift0 = jnp.zeros((M, 1), jnp.float32)
    s1 = jnp.full((1, 1), 1.0 / math.sqrt(1.0 + eps), jnp.float32)
    t1 = jnp.zeros((1, 1), jnp.float32)

    params = (W0, b0, Wgk, bgk, Wg, bg, cw2, scale0, shift0, s1, t1)

    x = jax.random.normal(ks[7], (B, M, N), jnp.float32)

    out = nextvlad_forward(x, params, G=G, K=K)
    jax.block_until_ready(out)

    ref = nextvlad_ref(x, params, G=G, K=K)
    jax.block_until_ready(ref)

    assert out.shape == (B, K * GS), out.shape
    # Tolerances account for bf16 MXU operands (f32 accumulation).
    if not jnp.allclose(out, ref, atol=2e-3, rtol=2e-2):
        raise AssertionError("Pallas kernel output does not match reference")

    print("KERNEL_OK")
</pallas_src>

<mosaic_0001>
module attributes {stable_mosaic.version = 11 : i64} {
  func.func @nextvlad_kernel(%arg0: i32, %arg1: memref<8x64xf32, #tpu.memory_space<vmem>>, %arg2: memref<64x128xbf16, #tpu.memory_space<vmem>>, %arg3: memref<1x128xf32, #tpu.memory_space<vmem>>, %arg4: memref<128x136xbf16, #tpu.memory_space<vmem>>, %arg5: memref<1x136xf32, #tpu.memory_space<vmem>>, %arg6: memref<16x16xf32, #tpu.memory_space<vmem>>, %arg7: memref<128x8xbf16, #tpu.memory_space<vmem>>, %arg8: memref<8x128xbf16, #tpu.memory_space<vmem>>, %arg9: memref<8x2xf32, #tpu.memory_space<vmem>>, %arg10: memref<2xf32, #tpu.memory_space<smem>>, %arg11: memref<1x16x16xf32, #tpu.memory_space<vmem>>) attributes {dimension_semantics = [#tpu.dimension_semantics<parallel>], iteration_bounds = array<i64: 2>, scalar_prefetch = 0 : i64, scratch_operands = 0 : i64, tpu.core_type = #tpu.core_type<tc>, window_params = [{transform_indices = @transform_0, window_bounds = array<i64: 8, 64>}, {pipeline_mode = #tpu.pipeline_mode<synchronous>, transform_indices = @transform_1, window_bounds = array<i64: 64, 128>}, {pipeline_mode = #tpu.pipeline_mode<synchronous>, transform_indices = @transform_2, window_bounds = array<i64: 1, 128>}, {pipeline_mode = #tpu.pipeline_mode<synchronous>, transform_indices = @transform_3, window_bounds = array<i64: 128, 136>}, {pipeline_mode = #tpu.pipeline_mode<synchronous>, transform_indices = @transform_4, window_bounds = array<i64: 1, 136>}, {pipeline_mode = #tpu.pipeline_mode<synchronous>, transform_indices = @transform_5, window_bounds = array<i64: 16, 16>}, {pipeline_mode = #tpu.pipeline_mode<synchronous>, transform_indices = @transform_6, window_bounds = array<i64: 128, 8>}, {pipeline_mode = #tpu.pipeline_mode<synchronous>, transform_indices = @transform_7, window_bounds = array<i64: 8, 128>}, {pipeline_mode = #tpu.pipeline_mode<synchronous>, transform_indices = @transform_8, window_bounds = array<i64: 8, 2>}, {transform_indices = @transform_9, window_bounds = array<i64: 2>}, {transform_indices = @transform_10, window_bounds = array<i64: 1, 16, 16>}]} {
    %c0 = arith.constant 0 : index
    %c0_0 = arith.constant 0 : index
    %0 = vector.load %arg1[%c0, %c0_0] : memref<8x64xf32, #tpu.memory_space<vmem>>, vector<8x64xf32>
    %1 = arith.truncf %0 : vector<8x64xf32> to vector<8x64xbf16>
    %c0_1 = arith.constant 0 : index
    %c0_2 = arith.constant 0 : index
    %2 = vector.load %arg2[%c0_1, %c0_2] : memref<64x128xbf16, #tpu.memory_space<vmem>>, vector<64x128xbf16>
    %cst = arith.constant dense<0.000000e+00> : vector<8x128xf32>
    %3 = tpu.matmul %1, %2, %cst {dimension_numbers = #tpu.dot_dimension_numbers<[1], [0], [0], [1], [0, 0, 1, 1], [], []>} : vector<8x64xbf16>, vector<64x128xbf16>, vector<8x128xf32> -> vector<8x128xf32>
    %c0_3 = arith.constant 0 : index
    %c0_4 = arith.constant 0 : index
    %4 = vector.load %arg3[%c0_3, %c0_4] : memref<1x128xf32, #tpu.memory_space<vmem>>, vector<1x128xf32>
    %5 = vector.broadcast %4 : vector<1x128xf32> to vector<8x128xf32>
    %6 = arith.addf %3, %5 : vector<8x128xf32>
    %7 = arith.truncf %6 : vector<8x128xf32> to vector<8x128xbf16>
    %c0_5 = arith.constant 0 : index
    %c0_6 = arith.constant 0 : index
    %8 = vector.load %arg4[%c0_5, %c0_6] : memref<128x136xbf16, #tpu.memory_space<vmem>>, vector<128x136xbf16>
    %cst_7 = arith.constant dense<0.000000e+00> : vector<8x136xf32>
    %9 = tpu.matmul %7, %8, %cst_7 {dimension_numbers = #tpu.dot_dimension_numbers<[1], [0], [0], [1], [0, 0, 1, 1], [], []>} : vector<8x128xbf16>, vector<128x136xbf16>, vector<8x136xf32> -> vector<8x136xf32>
    %c0_8 = arith.constant 0 : index
    %c0_9 = arith.constant 0 : index
    %10 = vector.load %arg5[%c0_8, %c0_9] : memref<1x136xf32, #tpu.memory_space<vmem>>, vector<1x136xf32>
    %11 = vector.broadcast %10 : vector<1x136xf32> to vector<8x136xf32>
    %12 = arith.addf %9, %11 : vector<8x136xf32>
    %13 = vector.extract_strided_slice %12 {offsets = [0, 0], sizes = [8, 128], strides = [1, 1]} : vector<8x136xf32> to vector<8x128xf32>
    %c0_10 = arith.constant 0 : index
    %c0_11 = arith.constant 0 : index
    %14 = vector.load %arg9[%c0_10, %c0_11] : memref<8x2xf32, #tpu.memory_space<vmem>>, vector<8x1xf32>
    %15 = vector.broadcast %14 : vector<8x1xf32> to vector<8x128xf32>
    %16 = arith.mulf %13, %15 : vector<8x128xf32>
    %c0_12 = arith.constant 0 : index
    %c1 = arith.constant 1 : index
    %17 = vector.load %arg9[%c0_12, %c1] : memref<8x2xf32, #tpu.memory_space<vmem>>, vector<8x1xf32>
    %18 = vector.broadcast %17 : vector<8x1xf32> to vector<8x128xf32>
    %19 = arith.addf %16, %18 : vector<8x128xf32>
    %20 = vector.extract_strided_slice %12 {offsets = [0, 128], sizes = [8, 8], strides = [1, 1]} : vector<8x136xf32> to vector<8x8xf32>
    %21 = arith.negf %20 : vector<8x8xf32>
    %22 = math.exp %21 : vector<8x8xf32>
    %cst_13 = arith.constant 1.000000e+00 : f32
    %23 = vector.broadcast %cst_13 : f32 to vector<8x8xf32>
    %24 = arith.addf %23, %22 : vector<8x8xf32>
    %25 = arith.divf %23, %24 : vector<8x8xf32>
    %c0_14 = arith.constant 0 : index
    %c0_15 = arith.constant 0 : index
    %26 = vector.load %arg8[%c0_14, %c0_15] : memref<8x128xbf16, #tpu.memory_space<vmem>>, vector<8x128xbf16>
    %27 = vector.extract_strided_slice %26 {offsets = [0, 0], sizes = [1, 128], strides = [1, 1]} : vector<8x128xbf16> to vector<1x128xbf16>
    %cst_16 = arith.constant 0.000000e+00 : bf16
    %28 = vector.broadcast %cst_16 : bf16 to vector<1x128xbf16>
    %29 = arith.cmpf ogt, %27, %28 : vector<1x128xbf16>
    %cst_17 = arith.constant -1.000000e+30 : f32
    %30 = vector.shape_cast %29 : vector<1x128xi1> to vector<1x128xi1>
    %31 = vector.broadcast %30 : vector<1x128xi1> to vector<8x128xi1>
    %32 = vector.broadcast %cst_17 : f32 to vector<8x128xf32>
    %33 = arith.select %31, %19, %32 : vector<8x128xi1>, vector<8x128xf32>
    %cst_18 = arith.constant dense<0xFF800000> : vector<8xf32>
    %34 = vector.multi_reduction <maximumf>, %33, %cst_18 [1] : vector<8x128xf32> to vector<8xf32>
    %35 = vector.shape_cast %34 : vector<8xf32> to vector<8x1xf32>
    %36 = vector.extract_strided_slice %26 {offsets = [1, 0], sizes = [1, 128], strides = [1, 1]} : vector<8x128xbf16> to vector<1x128xbf16>
    %cst_19 = arith.constant 0.000000e+00 : bf16
    %37 = vector.broadcast %cst_19 : bf16 to vector<1x128xbf16>
    %38 = arith.cmpf ogt, %36, %37 : vector<1x128xbf16>
    %cst_20 = arith.constant -1.000000e+30 : f32
    %39 = vector.shape_cast %38 : vector<1x128xi1> to vector<1x128xi1>
    %40 = vector.broadcast %39 : vector<1x128xi1> to vector<8x128xi1>
    %41 = vector.broadcast %cst_20 : f32 to vector<8x128xf32>
    %42 = arith.select %40, %19, %41 : vector<8x128xi1>, vector<8x128xf32>
    %cst_21 = arith.constant dense<0xFF800000> : vector<8xf32>
    %43 = vector.multi_reduction <maximumf>, %42, %cst_21 [1] : vector<8x128xf32> to vector<8xf32>
    %44 = vector.shape_cast %43 : vector<8xf32> to vector<8x1xf32>
    %45 = vector.extract_strided_slice %26 {offsets = [2, 0], sizes = [1, 128], strides = [1, 1]} : vector<8x128xbf16> to vector<1x128xbf16>
    %cst_22 = arith.constant 0.000000e+00 : bf16
    %46 = vector.broadcast %cst_22 : bf16 to vector<1x128xbf16>
    %47 = arith.cmpf ogt, %45, %46 : vector<1x128xbf16>
    %cst_23 = arith.constant -1.000000e+30 : f32
    %48 = vector.shape_cast %47 : vector<1x128xi1> to vector<1x128xi1>
    %49 = vector.broadcast %48 : vector<1x128xi1> to vector<8x128xi1>
    %50 = vector.broadcast %cst_23 : f32 to vector<8x128xf32>
    %51 = arith.select %49, %19, %50 : vector<8x128xi1>, vector<8x128xf32>
    %cst_24 = arith.constant dense<0xFF800000> : vector<8xf32>
    %52 = vector.multi_reduction <maximumf>, %51, %cst_24 [1] : vector<8x128xf32> to vector<8xf32>
    %53 = vector.shape_cast %52 : vector<8xf32> to vector<8x1xf32>
    %54 = vector.extract_strided_slice %26 {offsets = [3, 0], sizes = [1, 128], strides = [1, 1]} : vector<8x128xbf16> to vector<1x128xbf16>
    %cst_25 = arith.constant 0.000000e+00 : bf16
    %55 = vector.broadcast %cst_25 : bf16 to vector<1x128xbf16>
    %56 = arith.cmpf ogt, %54, %55 : vector<1x128xbf16>
    %cst_26 = arith.constant -1.000000e+30 : f32
    %57 = vector.shape_cast %56 : vector<1x128xi1> to vector<1x128xi1>
    %58 = vector.broadcast %57 : vector<1x128xi1> to vector<8x128xi1>
    %59 = vector.broadcast %cst_26 : f32 to vector<8x128xf32>
    %60 = arith.select %58, %19, %59 : vector<8x128xi1>, vector<8x128xf32>
    %cst_27 = arith.constant dense<0xFF800000> : vector<8xf32>
    %61 = vector.multi_reduction <maximumf>, %60, %cst_27 [1] : vector<8x128xf32> to vector<8xf32>
    %62 = vector.shape_cast %61 : vector<8xf32> to vector<8x1xf32>
    %63 = vector.extract_strided_slice %26 {offsets = [4, 0], sizes = [1, 128], strides = [1, 1]} : vector<8x128xbf16> to vector<1x128xbf16>
    %cst_28 = arith.constant 0.000000e+00 : bf16
    %64 = vector.broadcast %cst_28 : bf16 to vector<1x128xbf16>
    %65 = arith.cmpf ogt, %63, %64 : vector<1x128xbf16>
    %cst_29 = arith.constant -1.000000e+30 : f32
    %66 = vector.shape_cast %65 : vector<1x128xi1> to vector<1x128xi1>
    %67 = vector.broadcast %66 : vector<1x128xi1> to vector<8x128xi1>
    %68 = vector.broadcast %cst_29 : f32 to vector<8x128xf32>
    %69 = arith.select %67, %19, %68 : vector<8x128xi1>, vector<8x128xf32>
    %cst_30 = arith.constant dense<0xFF800000> : vector<8xf32>
    %70 = vector.multi_reduction <maximumf>, %69, %cst_30 [1] : vector<8x128xf32> to vector<8xf32>
    %71 = vector.shape_cast %70 : vector<8xf32> to vector<8x1xf32>
    %72 = vector.extract_strided_slice %26 {offsets = [5, 0], sizes = [1, 128], strides = [1, 1]} : vector<8x128xbf16> to vector<1x128xbf16>
    %cst_31 = arith.constant 0.000000e+00 : bf16
    %73 = vector.broadcast %cst_31 : bf16 to vector<1x128xbf16>
    %74 = arith.cmpf ogt, %72, %73 : vector<1x128xbf16>
    %cst_32 = arith.constant -1.000000e+30 : f32
    %75 = vector.shape_cast %74 : vector<1x128xi1> to vector<1x128xi1>
    %76 = vector.broadcast %75 : vector<1x128xi1> to vector<8x128xi1>
    %77 = vector.broadcast %cst_32 : f32 to vector<8x128xf32>
    %78 = arith.select %76, %19, %77 : vector<8x128xi1>, vector<8x128xf32>
    %cst_33 = arith.constant dense<0xFF800000> : vector<8xf32>
    %79 = vector.multi_reduction <maximumf>, %78, %cst_33 [1] : vector<8x128xf32> to vector<8xf32>
    %80 = vector.shape_cast %79 : vector<8xf32> to vector<8x1xf32>
    %81 = vector.extract_strided_slice %26 {offsets = [6, 0], sizes = [1, 128], strides = [1, 1]} : vector<8x128xbf16> to vector<1x128xbf16>
    %cst_34 = arith.constant 0.000000e+00 : bf16
    %82 = vector.broadcast %cst_34 : bf16 to vector<1x128xbf16>
    %83 = arith.cmpf ogt, %81, %82 : vector<1x128xbf16>
    %cst_35 = arith.constant -1.000000e+30 : f32
    %84 = vector.shape_cast %83 : vector<1x128xi1> to vector<1x128xi1>
    %85 = vector.broadcast %84 : vector<1x128xi1> to vector<8x128xi1>
    %86 = vector.broadcast %cst_35 : f32 to vector<8x128xf32>
    %87 = arith.select %85, %19, %86 : vector<8x128xi1>, vector<8x128xf32>
    %cst_36 = arith.constant dense<0xFF800000> : vector<8xf32>
    %88 = vector.multi_reduction <maximumf>, %87, %cst_36 [1] : vector<8x128xf32> to vector<8xf32>
    %89 = vector.shape_cast %88 : vector<8xf32> to vector<8x1xf32>
    %90 = vector.extract_strided_slice %26 {offsets = [7, 0], sizes = [1, 128], strides = [1, 1]} : vector<8x128xbf16> to vector<1x128xbf16>
    %cst_37 = arith.constant 0.000000e+00 : bf16
    %91 = vector.broadcast %cst_37 : bf16 to vector<1x128xbf16>
    %92 = arith.cmpf ogt, %90, %91 : vector<1x128xbf16>
    %cst_38 = arith.constant -1.000000e+30 : f32
    %93 = vector.shape_cast %92 : vector<1x128xi1> to vector<1x128xi1>
    %94 = vector.broadcast %93 : vector<1x128xi1> to vector<8x128xi1>
    %95 = vector.broadcast %cst_38 : f32 to vector<8x128xf32>
    %96 = arith.select %94, %19, %95 : vector<8x128xi1>, vector<8x128xf32>
    %cst_39 = arith.constant dense<0xFF800000> : vector<8xf32>
    %97 = vector.multi_reduction <maximumf>, %96, %cst_39 [1] : vector<8x128xf32> to vector<8xf32>
    %98 = vector.shape_cast %97 : vector<8xf32> to vector<8x1xf32>
    %99 = tpu.concatenate %35, %44, %53, %62, %71, %80, %89, %98 in 1 : vector<8x1xf32>, vector<8x1xf32>, vector<8x1xf32>, vector<8x1xf32>, vector<8x1xf32>, vector<8x1xf32>, vector<8x1xf32>, vector<8x1xf32> -> vector<8x8xf32>
    %100 = arith.truncf %99 : vector<8x8xf32> to vector<8x8xbf16>
    %cst_40 = arith.constant dense<0.000000e+00> : vector<8x128xf32>
    %101 = tpu.matmul %100, %26, %cst_40 {dimension_numbers = #tpu.dot_dimension_numbers<[1], [0], [0], [1], [0, 0, 1, 1], [], []>} : vector<8x8xbf16>, vector<8x128xbf16>, vector<8x128xf32> -> vector<8x128xf32>
    %102 = arith.subf %19, %101 : vector<8x128xf32>
    %103 = math.exp %102 : vector<8x128xf32>
    %104 = arith.truncf %103 : vector<8x128xf32> to vector<8x128xbf16>
    %c0_41 = arith.constant 0 : index
    %c0_42 = arith.constant 0 : index
    %105 = vector.load %arg7[%c0_41, %c0_42] : memref<128x8xbf16, #tpu.memory_space<vmem>>, vector<128x8xbf16>
    %cst_43 = arith.constant dense<0.000000e+00> : vector<8x8xf32>
    %106 = tpu.matmul %104, %105, %cst_43 {dimension_numbers = #tpu.dot_dimension_numbers<[1], [0], [0], [1], [0, 0, 1, 1], [], []>} : vector<8x128xbf16>, vector<128x8xbf16>, vector<8x8xf32> -> vector<8x8xf32>
    %107 = arith.divf %25, %106 : vector<8x8xf32>
    %108 = arith.truncf %107 : vector<8x8xf32> to vector<8x8xbf16>
    %cst_44 = arith.constant dense<0.000000e+00> : vector<8x128xf32>
    %109 = tpu.matmul %108, %26, %cst_44 {dimension_numbers = #tpu.dot_dimension_numbers<[1], [0], [0], [1], [0, 0, 1, 1], [], []>} : vector<8x8xbf16>, vector<8x128xbf16>, vector<8x128xf32> -> vector<8x128xf32>
    %110 = arith.mulf %103, %109 : vector<8x128xf32>
    %111 = arith.truncf %110 : vector<8x128xf32> to vector<8x128xbf16>
    %112 = vector.shape_cast %7 : vector<8x128xbf16> to vector<1x8x128xbf16>
    %113 = vector.shape_cast %111 : vector<8x128xbf16> to vector<1x8x128xbf16>
    %114 = arith.extf %113 : vector<1x8x128xbf16> to vector<1x8x128xf32>
    %cst_45 = arith.constant dense<0.000000e+00> : vector<1x128xf32>
    %115 = vector.multi_reduction <add>, %114, %cst_45 [1] : vector<1x8x128xf32> to vector<1x128xf32>
    %cst_46 = arith.constant 0.000000e+00 : f32
    %116 = vector.broadcast %cst_46 : f32 to vector<1x16x16xf32>
    %cst_47 = arith.constant 0.000000e+00 : f32
    %117 = vector.broadcast %cst_47 : f32 to vector<1x16xf32>
    %118 = vector.extract_strided_slice %112 {offsets = [0, 0, 0], sizes = [1, 8, 16], strides = [1, 1, 1]} : vector<1x8x128xbf16> to vector<1x8x16xbf16>
    %119 = vector.extract_strided_slice %113 {offsets = [0, 0, 0], sizes = [1, 8, 16], strides = [1, 1, 1]} : vector<1x8x128xbf16> to vector<1x8x16xbf16>
    %cst_48 = arith.constant dense<0.000000e+00> : vector<1x16x16xf32>
    %120 = tpu.matmul %118, %119, %cst_48 {dimension_numbers = #tpu.dot_dimension_numbers<[1], [1], [2], [2], [0, 0, 0, 2, 1, 2], [0], [0]>} : vector<1x8x16xbf16>, vector<1x8x16xbf16>, vector<1x16x16xf32> -> vector<1x16x16xf32>
    %121 = arith.addf %116, %120 : vector<1x16x16xf32>
    %122 = vector.extract_strided_slice %115 {offsets = [0, 0], sizes = [1, 16], strides = [1, 1]} : vector<1x128xf32> to vector<1x16xf32>
    %123 = arith.addf %117, %122 : vector<1x16xf32>
    %124 = vector.extract_strided_slice %112 {offsets = [0, 0, 16], sizes = [1, 8, 16], strides = [1, 1, 1]} : vector<1x8x128xbf16> to vector<1x8x16xbf16>
    %125 = vector.extract_strided_slice %113 {offsets = [0, 0, 16], sizes = [1, 8, 16], strides = [1, 1, 1]} : vector<1x8x128xbf16> to vector<1x8x16xbf16>
    %cst_49 = arith.constant dense<0.000000e+00> : vector<1x16x16xf32>
    %126 = tpu.matmul %124, %125, %cst_49 {dimension_numbers = #tpu.dot_dimension_numbers<[1], [1], [2], [2], [0, 0, 0, 2, 1, 2], [0], [0]>} : vector<1x8x16xbf16>, vector<1x8x16xbf16>, vector<1x16x16xf32> -> vector<1x16x16xf32>
    %127 = arith.addf %121, %126 : vector<1x16x16xf32>
    %128 = vector.extract_strided_slice %115 {offsets = [0, 16], sizes = [1, 16], strides = [1, 1]} : vector<1x128xf32> to vector<1x16xf32>
    %129 = arith.addf %123, %128 : vector<1x16xf32>
    %130 = vector.extract_strided_slice %112 {offsets = [0, 0, 32], sizes = [1, 8, 16], strides = [1, 1, 1]} : vector<1x8x128xbf16> to vector<1x8x16xbf16>
    %131 = vector.extract_strided_slice %113 {offsets = [0, 0, 32], sizes = [1, 8, 16], strides = [1, 1, 1]} : vector<1x8x128xbf16> to vector<1x8x16xbf16>
    %cst_50 = arith.constant dense<0.000000e+00> : vector<1x16x16xf32>
    %132 = tpu.matmul %130, %131, %cst_50 {dimension_numbers = #tpu.dot_dimension_numbers<[1], [1], [2], [2], [0, 0, 0, 2, 1, 2], [0], [0]>} : vector<1x8x16xbf16>, vector<1x8x16xbf16>, vector<1x16x16xf32> -> vector<1x16x16xf32>
    %133 = arith.addf %127, %132 : vector<1x16x16xf32>
    %134 = vector.extract_strided_slice %115 {offsets = [0, 32], sizes = [1, 16], strides = [1, 1]} : vector<1x128xf32> to vector<1x16xf32>
    %135 = arith.addf %129, %134 : vector<1x16xf32>
    %136 = vector.extract_strided_slice %112 {offsets = [0, 0, 48], sizes = [1, 8, 16], strides = [1, 1, 1]} : vector<1x8x128xbf16> to vector<1x8x16xbf16>
    %137 = vector.extract_strided_slice %113 {offsets = [0, 0, 48], sizes = [1, 8, 16], strides = [1, 1, 1]} : vector<1x8x128xbf16> to vector<1x8x16xbf16>
    %cst_51 = arith.constant dense<0.000000e+00> : vector<1x16x16xf32>
    %138 = tpu.matmul %136, %137, %cst_51 {dimension_numbers = #tpu.dot_dimension_numbers<[1], [1], [2], [2], [0, 0, 0, 2, 1, 2], [0], [0]>} : vector<1x8x16xbf16>, vector<1x8x16xbf16>, vector<1x16x16xf32> -> vector<1x16x16xf32>
    %139 = arith.addf %133, %138 : vector<1x16x16xf32>
    %140 = vector.extract_strided_slice %115 {offsets = [0, 48], sizes = [1, 16], strides = [1, 1]} : vector<1x128xf32> to vector<1x16xf32>
    %141 = arith.addf %135, %140 : vector<1x16xf32>
    %142 = vector.extract_strided_slice %112 {offsets = [0, 0, 64], sizes = [1, 8, 16], strides = [1, 1, 1]} : vector<1x8x128xbf16> to vector<1x8x16xbf16>
    %143 = vector.extract_strided_slice %113 {offsets = [0, 0, 64], sizes = [1, 8, 16], strides = [1, 1, 1]} : vector<1x8x128xbf16> to vector<1x8x16xbf16>
    %cst_52 = arith.constant dense<0.000000e+00> : vector<1x16x16xf32>
    %144 = tpu.matmul %142, %143, %cst_52 {dimension_numbers = #tpu.dot_dimension_numbers<[1], [1], [2], [2], [0, 0, 0, 2, 1, 2], [0], [0]>} : vector<1x8x16xbf16>, vector<1x8x16xbf16>, vector<1x16x16xf32> -> vector<1x16x16xf32>
    %145 = arith.addf %139, %144 : vector<1x16x16xf32>
    %146 = vector.extract_strided_slice %115 {offsets = [0, 64], sizes = [1, 16], strides = [1, 1]} : vector<1x128xf32> to vector<1x16xf32>
    %147 = arith.addf %141, %146 : vector<1x16xf32>
    %148 = vector.extract_strided_slice %112 {offsets = [0, 0, 80], sizes = [1, 8, 16], strides = [1, 1, 1]} : vector<1x8x128xbf16> to vector<1x8x16xbf16>
    %149 = vector.extract_strided_slice %113 {offsets = [0, 0, 80], sizes = [1, 8, 16], strides = [1, 1, 1]} : vector<1x8x128xbf16> to vector<1x8x16xbf16>
    %cst_53 = arith.constant dense<0.000000e+00> : vector<1x16x16xf32>
    %150 = tpu.matmul %148, %149, %cst_53 {dimension_numbers = #tpu.dot_dimension_numbers<[1], [1], [2], [2], [0, 0, 0, 2, 1, 2], [0], [0]>} : vector<1x8x16xbf16>, vector<1x8x16xbf16>, vector<1x16x16xf32> -> vector<1x16x16xf32>
    %151 = arith.addf %145, %150 : vector<1x16x16xf32>
    %152 = vector.extract_strided_slice %115 {offsets = [0, 80], sizes = [1, 16], strides = [1, 1]} : vector<1x128xf32> to vector<1x16xf32>
    %153 = arith.addf %147, %152 : vector<1x16xf32>
    %154 = vector.extract_strided_slice %112 {offsets = [0, 0, 96], sizes = [1, 8, 16], strides = [1, 1, 1]} : vector<1x8x128xbf16> to vector<1x8x16xbf16>
    %155 = vector.extract_strided_slice %113 {offsets = [0, 0, 96], sizes = [1, 8, 16], strides = [1, 1, 1]} : vector<1x8x128xbf16> to vector<1x8x16xbf16>
    %cst_54 = arith.constant dense<0.000000e+00> : vector<1x16x16xf32>
    %156 = tpu.matmul %154, %155, %cst_54 {dimension_numbers = #tpu.dot_dimension_numbers<[1], [1], [2], [2], [0, 0, 0, 2, 1, 2], [0], [0]>} : vector<1x8x16xbf16>, vector<1x8x16xbf16>, vector<1x16x16xf32> -> vector<1x16x16xf32>
    %157 = arith.addf %151, %156 : vector<1x16x16xf32>
    %158 = vector.extract_strided_slice %115 {offsets = [0, 96], sizes = [1, 16], strides = [1, 1]} : vector<1x128xf32> to vector<1x16xf32>
    %159 = arith.addf %153, %158 : vector<1x16xf32>
    %160 = vector.extract_strided_slice %112 {offsets = [0, 0, 112], sizes = [1, 8, 16], strides = [1, 1, 1]} : vector<1x8x128xbf16> to vector<1x8x16xbf16>
    %161 = vector.extract_strided_slice %113 {offsets = [0, 0, 112], sizes = [1, 8, 16], strides = [1, 1, 1]} : vector<1x8x128xbf16> to vector<1x8x16xbf16>
    %cst_55 = arith.constant dense<0.000000e+00> : vector<1x16x16xf32>
    %162 = tpu.matmul %160, %161, %cst_55 {dimension_numbers = #tpu.dot_dimension_numbers<[1], [1], [2], [2], [0, 0, 0, 2, 1, 2], [0], [0]>} : vector<1x8x16xbf16>, vector<1x8x16xbf16>, vector<1x16x16xf32> -> vector<1x16x16xf32>
    %163 = arith.addf %157, %162 : vector<1x16x16xf32>
    %164 = vector.extract_strided_slice %115 {offsets = [0, 112], sizes = [1, 16], strides = [1, 1]} : vector<1x128xf32> to vector<1x16xf32>
    %165 = arith.addf %159, %164 : vector<1x16xf32>
    %166 = vector.shape_cast %165 : vector<1x16xf32> to vector<1x1x16xf32>
    %c0_56 = arith.constant 0 : index
    %c0_57 = arith.constant 0 : index
    %167 = vector.load %arg6[%c0_56, %c0_57] : memref<16x16xf32, #tpu.memory_space<vmem>>, vector<16x16xf32>
    %168 = vector.shape_cast %167 : vector<16x16xf32> to vector<1x16x16xf32>
    %169 = vector.broadcast %166 : vector<1x1x16xf32> to vector<1x16x16xf32>
    %170 = arith.mulf %169, %168 : vector<1x16x16xf32>
    %171 = arith.subf %163, %170 : vector<1x16x16xf32>
    %172 = math.absf %171 : vector<1x16x16xf32>
    %cst_58 = arith.constant dense<0.000000e+00> : vector<1x16xf32>
    %173 = vector.multi_reduction <add>, %172, %cst_58 [1] : vector<1x16x16xf32> to vector<1x16xf32>
    %174 = vector.shape_cast %173 : vector<1x16xf32> to vector<1x1x16xf32>
    %cst_59 = arith.constant 9.99999996E-13 : f32
    %175 = vector.broadcast %cst_59 : f32 to vector<1x1x16xf32>
    %176 = arith.maximumf %174, %175 : vector<1x1x16xf32>
    %177 = vector.broadcast %176 : vector<1x1x16xf32> to vector<1x16x16xf32>
    %178 = arith.divf %171, %177 : vector<1x16x16xf32>
    %c0_60 = arith.constant 0 : index
    %179 = memref.load %arg10[%c0_60] : memref<2xf32, #tpu.memory_space<smem>>
    %180 = vector.broadcast %179 : f32 to vector<1x16x16xf32>
    %181 = arith.mulf %178, %180 : vector<1x16x16xf32>
    %c1_61 = arith.constant 1 : index
    %182 = memref.load %arg10[%c1_61] : memref<2xf32, #tpu.memory_space<smem>>
    %183 = vector.broadcast %182 : f32 to vector<1x16x16xf32>
    %184 = arith.addf %181, %183 : vector<1x16x16xf32>
    %c0_62 = arith.constant 0 : index
    %c0_63 = arith.constant 0 : index
    %c0_64 = arith.constant 0 : index
    %185 = vector.load %arg11[%c0_62, %c0_63, %c0_64] : memref<1x16x16xf32, #tpu.memory_space<vmem>>, vector<1x16x16xf32>
    tpu.vector_store %arg11[%c0_62, %c0_63, %c0_64], %184 {strides = array<i32>} : memref<1x16x16xf32, #tpu.memory_space<vmem>>, vector<1x16x16xf32>,
    return
  }
  func.func @transform_0(%arg0: i32) -> (i32, i32) {
    %c0_i32 = arith.constant 0 : i32
    %c0_i32_0 = arith.constant 0 : i32
    return %arg0, %c0_i32 : i32, i32
  }
  func.func @transform_1(%arg0: i32) -> (i32, i32) {
    %c0_i32 = arith.constant 0 : i32
    %c0_i32_0 = arith.constant 0 : i32
    %c0_i32_1 = arith.constant 0 : i32
    return %c0_i32, %c0_i32_0 : i32, i32
  }
  func.func @transform_2(%arg0: i32) -> (i32, i32) {
    %c0_i32 = arith.constant 0 : i32
    %c0_i32_0 = arith.constant 0 : i32
    %c0_i32_1 = arith.constant 0 : i32
    return %c0_i32, %c0_i32_0 : i32, i32
  }
  func.func @transform_3(%arg0: i32) -> (i32, i32) {
    %c0_i32 = arith.constant 0 : i32
    %c0_i32_0 = arith.constant 0 : i32
    %c0_i32_1 = arith.constant 0 : i32
    return %c0_i32, %c0_i32_0 : i32, i32
  }
  func.func @transform_4(%arg0: i32) -> (i32, i32) {
    %c0_i32 = arith.constant 0 : i32
    %c0_i32_0 = arith.constant 0 : i32
    %c0_i32_1 = arith.constant 0 : i32
    return %c0_i32, %c0_i32_0 : i32, i32
  }
  func.func @transform_5(%arg0: i32) -> (i32, i32) {
    %c0_i32 = arith.constant 0 : i32
    %c0_i32_0 = arith.constant 0 : i32
    %c0_i32_1 = arith.constant 0 : i32
    return %c0_i32, %c0_i32_0 : i32, i32
  }
  func.func @transform_6(%arg0: i32) -> (i32, i32) {
    %c0_i32 = arith.constant 0 : i32
    %c0_i32_0 = arith.constant 0 : i32
    %c0_i32_1 = arith.constant 0 : i32
    return %c0_i32, %c0_i32_0 : i32, i32
  }
  func.func @transform_7(%arg0: i32) -> (i32, i32) {
    %c0_i32 = arith.constant 0 : i32
    %c0_i32_0 = arith.constant 0 : i32
    %c0_i32_1 = arith.constant 0 : i32
    return %c0_i32, %c0_i32_0 : i32, i32
  }
  func.func @transform_8(%arg0: i32) -> (i32, i32) {
    %c0_i32 = arith.constant 0 : i32
    %c0_i32_0 = arith.constant 0 : i32
    %c0_i32_1 = arith.constant 0 : i32
    return %c0_i32, %c0_i32_0 : i32, i32
  }
  func.func @transform_9(%arg0: i32) -> i32 {
    %c0_i32 = arith.constant 0 : i32
    %c0_i32_0 = arith.constant 0 : i32
    return %c0_i32 : i32
  }
  func.func @transform_10(%arg0: i32) -> (i32, i32, i32) {
    %c0_i32 = arith.constant 0 : i32
    %c0_i32_0 = arith.constant 0 : i32
    %c0_i32_1 = arith.constant 0 : i32
    return %arg0, %c0_i32, %c0_i32_0 : i32, i32, i32
  }
}

</mosaic_0001>

<bundles_post_ra>
// kernel: tpu_custom_call.1
= control target key start
LH: loop header
LB: loop body
LE: loop exit
PB: predicated region body
PF: predicated region fallthrough
CT: control target
= control target key end

     0   :  { %15 = vsyncpa [#allocation4], 0  ;;  %s2496_s0 = inlined_call_operand.vmem [shape: f32[16,64], index: 0, kind: input, shape index: {}]   ;;  %s2497_s1 = inlined_call_operand.vmem [shape: bf16[64,128], index: 1, kind: input, shape index: {}]   ;;  %s2498_s2 = inlined_call_operand.vmem [shape: f32[1,128], index: 2, kind: input, shape index: {}]   ;;  %s2499_s3 = inlined_call_operand.vmem [shape: bf16[128,136], index: 3, kind: input, shape index: {}]   ;;  %s2500_s4 = inlined_call_operand.vmem [shape: f32[1,136], index: 4, kind: input, shape index: {}]   ;;  %s2501_s5 = inlined_call_operand.vmem [shape: f32[16,16], index: 5, kind: input, shape index: {}]   ;;  %s2502_s6 = inlined_call_operand.vmem [shape: bf16[128,8], index: 6, kind: input, shape index: {}]   ;;  %s2503_s7 = inlined_call_operand.vmem [shape: bf16[8,128], index: 7, kind: input, shape index: {}]   ;;  %s2504_s8 = inlined_call_operand.vmem [shape: f32[8,2], index: 8, kind: input, shape index: {}]   ;;  %s2505_s9 = inlined_call_operand.vmem [shape: f32[2], index: 9, kind: input, shape index: {}]   ;;  %s2506_s10 = inlined_call_operand.hbm [shape: f32[2,16,16], index: 10, kind: output, shape index: {}]  }
   0x1   :  { %16 = vsyncpa [#allocation3], 0 }
   0x2   :  { %18 = vsyncpa [#allocation3 + $0x1], 0  ;;  %s2123_s13 = smov 0   ;;  %s2125_s14 = smov 0  }
   0x3   :  { %s2127_s15 = smov 0   ;;  %s2129_s16 = smov 0  }
   0x4 LB: > { %s2144_s17 = sadd.s32 4294967295, %s2051_s16   ;;  %s1649_s18 = sadd.s32 4294967294, %s2051_s16   ;;  %s2051_s16 = sphi %s2129_s16, %s2516_s16   ;;  %s2047_s15 = sphi %s2127_s15, %s2515_s15   ;;  %s2043_s14 = sphi %s2125_s14, %s2514_s14   ;;  %s2039_s13 = sphi %s2123_s13, %s2513_s13  }
   0x5   : > { %s2148_s19 = sadd.s32 1, %s2051_s16   ;;  %s246_s20 = sadd.s32 1, %s2047_s15 }
   0x6   : > { %s243_s21 = ssub.s32 %s2051_s16, %s2148_s19  ;;  %p256_p0 = scmp.ne.s32.totalorder %s2047_s15, %s2043_s14 }
   0x7   : > { %p244_p1 = scmp.eq.s32.totalorder %s243_s21, 0  ;;  %p257_p2 = scmp.eq.s32.totalorder %s2144_s17, 1 }
   0x8   : > { %p262_p3 = scmp.ne.s32.totalorder %s2043_s14, %s2039_s13  ;;  %p263_p4 = scmp.eq.s32.totalorder %s1649_s18, 1 }
   0x9   : > { %s2159_s22 = scalar_select %p244_p1, %s2047_s15, %s246_s20  }
   0xa   : > { %p2161_p5 = por %p257_p2, %p256_p0  ;;  %p2165_p6 = por %p263_p4, %p262_p3 }
   0xb   : > { %p1650_p7 = scmp.ge.s32.totalorder %s2051_s16, 1  ;;  %p270_p8 = scmp.lt.s32.totalorder %s2051_s16, 3 }
   0xc   : > { %p1873_p9 = scmp.eq.s32.totalorder %s2144_s17, 0  ;;  %s307_s28 = sshll.u32 %s2505_s9, 4  ;;  %s308_s28 = int_to_ptr.vmem [resolvable:$true] %s307_s28 }
   0xd   : > { %p2172_p10 = pnand %p1650_p7, %p270_p8  ;;  %s1970_s29 = scalar_lea.vmem %s308_s28, 16 }
   0xe   : > { %p1971_p13 = scmp.ne.s32.totalorder %s308_s28, %s1970_s29  ;;  %p1978_p3 = scmp.lt.s32.totalorder %s308_s28, %s308_s28 }
   0xf   : > { %p1865_p11 = pneg %p2172_p10  ;;  %p1979_p4 = scmp.lt.s32.totalorder %s1970_s29, %s1970_s29 }
  0x11   : > { %p1866_p12 = pnand %p1873_p9, %p1865_p11  ;;  %p1980_p7 = por %p1979_p4, %p1978_p3 }
  0x13   : > { %p1972_p0 = pneg %p1866_p12 }
  0x15   : > { %p1973_p1 = pnand %p1972_p0, %p1971_p13 }
  0x17   : > { %p1974_p2 = pneg %p1973_p1 }
  0x19   : > { %p1981_p8 = pnand %p1980_p7, %p1974_p2 }
  0x1b   : > { %1984 = shalt.err (!%p1981_p8)
}
  0x1c   : > { %s2053_s30 = smov [#allocation2]   ;;  %327 = sbr.rel (%p2172_p10) target bundleno = 1910 (0x776), region = 60 }
  0x1d   : > { %1868 = dma.vmem_to_smem (!%p1866_p12), %s308_s28, 16, %s2053_s30, [#allocation4]  }
  0x23   : > { %2030 = dma.done.wait (%p1873_p9), [#allocation4], 16  }
  0x24   : > { %2032 = vsyncadd (%p1873_p9), [#allocation4], 4294967280 }
  0x25   : > { %333 = sfence }
  0x26   : > { %v1924_v0 = vld [vmem:[%s2497_s1] sm:$0xff]   ;;  %v2054_v1 = vmov 0.0   ;;  %v1925_v2 = vld [vmem:[%s2497_s1 + $0x8] sm:$0xff]   ;;  %vm2055_vm0 = vmmov 0   ;;  %p365_p9 = scmp.lt.s32.totalorder %s2144_s17, 1  ;;  %v1926_v3 = vld [vmem:[%s2497_s1 + $0x10] sm:$0xff]   ;;  %v476_v36 = vlaneseq }
  0x27   : > { %1739 = vmatprep.subr.bf16.mxu0 %v2054_v1  ;;  %1751 = vmatprep.subr.bf16.mxu1 %v2054_v1  ;;  %v1927_v4 = vld [vmem:[%s2497_s1 + $0x18] sm:$0xff]   ;;  %v1930_v6 = vld [vmem:[%s2499_s3 + $0x4] ss:$8 sps:$4 sm:$0xff]   ;;  %v1928_v8 = vld [vmem:[%s2499_s3] ss:$8 sps:$4 sm:$0xff]   ;;  %vm413_vm1 = vcmask 523264  }
  0x28   : > { %1740 = vmatpush3.bf16.msra.mxu0 %v1924_v0  ;;  %1747 = vmatprep.mubr.msk.bf16.mxu0 %vm2055_vm0, %v2054_v1  ;;  %s366_s21 = scalar_select %p365_p9, %s2144_s17, 1  ;;  %v1933_v9 = vld [vmem:[%s2499_s3 + $0x14] ss:$8 sps:$4 sm:$0xff]   ;;  %v1931_v10 = vld [vmem:[%s2499_s3 + $0x10] ss:$8 sps:$4 sm:$0xff]   ;;  %v2056_v23 = vmov 0  }
  0x29   : > { %1741 = vmatprep.subr.bf16.mxu0 %v2054_v1  ;;  %1753 = vmatprep.mubr.msk.bf16.mxu1 %vm2055_vm0, %v2054_v1  ;;  %v1936_v11 = vld [vmem:[%s2499_s3 + $0x24] ss:$8 sps:$4 sm:$0xff]   ;;  %v1934_v12 = vld [vmem:[%s2499_s3 + $0x20] ss:$8 sps:$4 sm:$0xff]   ;;  %v1939_v13 = vld [vmem:[%s2499_s3 + $0x34] ss:$8 sps:$4 sm:$0xff]  }
  0x2a   : > { %s1656_s27 = sshll.u32 %s366_s21, 3  ;;  %v1937_v14 = vld [vmem:[%s2499_s3 + $0x30] ss:$8 sps:$4 sm:$0xff]   ;;  %v1942_v15 = vld [vmem:[%s2499_s3 + $0x44] ss:$8 sps:$4 sm:$0xff]   ;;  %1922 = vset.pattern.permute.xlu0 %v2056_v23  ;;  %v2057_v25 = vmov 1  }
  0x2b   : > { %s368_s30 = scalar_lea.vmem %s2496_s0, %s1656_s27  ;;  %v1940_v16 = vld [vmem:[%s2499_s3 + $0x40] ss:$8 sps:$4 sm:$0xff]   ;;  %v1945_v17 = vld [vmem:[%s2499_s3 + $0x54] ss:$8 sps:$4 sm:$0xff]   ;;  %v1943_v18 = vld [vmem:[%s2499_s3 + $0x50] ss:$8 sps:$4 sm:$0xff]  }
  0x2c   : > { %1742 = vmatpush3.bf16.msra.mxu0 %v1925_v2  ;;  %v372_v5 = vld [vmem:[%s368_s30] sm:$0xff]  ;;  %v1951_v21 = vld [vmem:[%s2499_s3 + $0x74] ss:$8 sps:$4 sm:$0xff]   ;;  %v1949_v22 = vld [vmem:[%s2499_s3 + $0x70] ss:$8 sps:$4 sm:$0xff]   ;;  %v2285_v38 = vshrl.u32 %v476_v36, 7 }
  0x2d   : > { %1743 = vmatprep.subr.bf16.mxu0 %v2054_v1  ;;  %v373_v7 = vpack.c.bf16 %v372_v5, %v372_v5  ;;  %v1948_v19 = vld [vmem:[%s2499_s3 + $0x64] ss:$8 sps:$4 sm:$0xff]   ;;  %v1946_v20 = vld [vmem:[%s2499_s3 + $0x60] ss:$8 sps:$4 sm:$0xff]   ;;  %s2058_s29 = smov 96   ;;  %s2059_s30 = smov 112  }
  0x2e   : > { %v607_v24 = vld [vmem:[%s2504_s8] sm:$0xff]  ;;  %v2288_v40 = vsub.s32 0, %v2285_v38  ;;  %s2507_s11 = smov 48   ;;  %s2061_s12 = smov 80  }
  0x2f   : > { %610 = vperm.xlu0 %1922, %v607_v24   ;;  %v1657_v26 = vld [vmem:[%s2498_s2] ss:$0 sm:$0xff]  ;;  %s2063_s18 = smov 32   ;;  %s2064_s20 = smov 16  }
  0x30   : > { %1744 = vmatpush3.bf16.msra.mxu0 %v1926_v3  ;;  %v2280_v33 = vld [vmem:[%s2503_s7] sm:$0xf]  ;;  %s2512_s21 = smov 48   ;;  %s362_s26 = sand.u32 1, %s2043_s14  }
  0x31   : > { %1745 = vmatprep.subr.bf16.mxu0 %v2054_v1  ;;  %vm626_vm2 = vcmp.gt.bf16.partialorder %v2280_v33, 0  ;;  %v2293_v41 = vld [vmem:[%s2500_s4] sm:$0x3]  ;;  %s1551_s28 = sld [smem:[#allocation2]]  ;;  %s1698_s27 = sld [smem:[#allocation2 + $0x1]] }
  0x32   : > { %v627_v34 = vsel %vm626_vm2, 65537, %v2056_v23  ;;  %v479_v44 = vrot.slane %v2293_v41, %v2288_v40 }
  0x33   : > { %1923 = vset.pattern.permute.xlu0 %v2057_v25  ;;  %v628_v35 = vunpack.c.l.b16 %v627_v34 }
  0x34   : > { %1746 = vmatpush3.bf16.msra.mxu0 %v1927_v4  ;;  %615 = vperm.xlu0 %1923, %v607_v24  }
  0x35   : > { %566 = vmatprep.subr.bf16.mxu0 %v1930_v6  ;;  %vm629_vm3 = vcmp.ne.s32.totalorder %v628_v35, 0 }
  0x36   : > { %v630_v37 = vsel %vm629_vm3, 1, %v2056_v23 }
  0x37   : > { %1748 = vmatmul.mubr.msk.bf16.vlgmr.msra.gmra.mrb[0].mxu0 %vm413_vm1, %v373_v7  ;;  %v661_v39 = vrot.slane %v630_v37, 3  ;;  %v639_v42 = vrot.slane %v630_v37, 1  ;;  %v650_v46 = vrot.slane %v630_v37, 2  ;;  %v634_v49 = vrot.slane %v630_v37, %v2288_v40 }
  0x38   : > { %567 = vmatpush1.bf16.msra.mxu0 %v1928_v8  ;;  %598 = vmatprep.mubr.bf16.mxu0 %v2056_v23  ;;  %v672_v55 = vrot.slane %v630_v37, 4  ;;  %v683_v61 = vrot.slane %v630_v37, 5  ;;  %v694_v3 = vrot.slane %v630_v37, 6  ;;  %v705_v7 = vrot.slane %v630_v37, 7  ;;  %v1954_v37 = vld [vmem:[%s2502_s6 + $0x10] sm:$0xff]  }
  0x39   : > { %568 = vmatprep.subr.bf16.mxu0 %v1933_v9  ;;  %vm662_vm4 = vcmp.ne.s32.totalorder %v661_v39, 0  ;;  %vm640_vm5 = vcmp.ne.s32.totalorder %v639_v42, 0  ;;  %vm651_vm6 = vcmp.ne.s32.totalorder %v650_v46, 0  ;;  %vm635_vm8 = vcmp.eq.s32.totalorder %v634_v49, 1  ;;  %v1958_v46 = vld [vmem:[%s2502_s6 + $0x30] sm:$0xff]  }
  0x3a   : > { %v663_v45 = vsel %vm662_vm4, 1, %v2056_v23  ;;  %v641_v52 = vsel %vm640_vm5, 1, %v2056_v23  ;;  %v652_v60 = vsel %vm651_vm6, 1, %v2056_v23  ;;  %vm673_vm9 = vcmp.ne.s32.totalorder %v672_v55, 0 }
  0x3b   : > { %v667_v48 = vrot.slane %v663_v45, %v2288_v40  ;;  %v645_v58 = vrot.slane %v641_v52, %v2288_v40  ;;  %v656_v0 = vrot.slane %v652_v60, %v2288_v40  ;;  %v674_v2 = vsel %vm673_vm9, 1, %v2056_v23  ;;  %v1957_v45 = vld [vmem:[%s2502_s6 + $0x28] sm:$0xff]  }
  0x3c   : > { %569 = vmatpush1.bf16.msra.mxu0 %v1931_v10  ;;  %vm684_vm11 = vcmp.ne.s32.totalorder %v683_v61, 0  ;;  %v678_v5 = vrot.slane %v674_v2, %v2288_v40  ;;  %vm695_vm13 = vcmp.ne.s32.totalorder %v694_v3, 0  ;;  %vm706_vm15 = vcmp.ne.s32.totalorder %v705_v7, 0 }
  0x3d   : > { %570 = vmatprep.subr.bf16.mxu0 %v1936_v11  ;;  %vm668_vm7 = vcmp.eq.s32.totalorder %v667_v48, 1  ;;  %vm646_vm10 = vcmp.eq.s32.totalorder %v645_v58, 1  ;;  %vm657_vm12 = vcmp.eq.s32.totalorder %v656_v0, 1  ;;  %v685_v6 = vsel %vm684_vm11, 1, %v2056_v23 }
  0x3e   : > { %vm679_vm14 = vcmp.eq.s32.totalorder %v678_v5, 1  ;;  %v689_v9 = vrot.slane %v685_v6, %v2288_v40  ;;  %v696_v10 = vsel %vm695_vm13, 1, %v2056_v23  ;;  %vm735_vm4 = vcmask 1043456  }
  0x3f   : > { %vm716_vm5 = vcmask 7168   ;;  %vm718_vm6 = vcmask 15360   ;;  %vm724_vm9 = vcmask 39936   ;;  %vm728_vm11 = vcmask 56320  }
  0x40   : > { %571 = vmatpush1.bf16.msra.mxu0 %v1934_v12  ;;  %vm690_vm1 = vcmp.eq.s32.totalorder %v689_v9, 1  ;;  %v700_v12 = vrot.slane %v696_v10, %v2288_v40 }
  0x41   : > { %572 = vmatprep.subr.bf16.mxu0 %v1939_v13  ;;  %v707_v13 = vsel %vm706_vm15, 1, %v2056_v23 }
  0x42   : > { %vm701_vm2 = vcmp.eq.s32.totalorder %v700_v12, 1 }
  0x44   : > { %573 = vmatpush1.bf16.msra.mxu0 %v1937_v14 }
  0x45   : > { %574 = vmatprep.subr.bf16.mxu0 %v1942_v15  ;;  %v711_v15 = vrot.slane %v707_v13, %v2288_v40 }
  0x47   : > { %vm712_vm3 = vcmp.eq.s32.totalorder %v711_v15, 1 }
  0x48   : > { %575 = vmatpush1.bf16.msra.mxu0 %v1940_v16 }
  0x49   : > { %576 = vmatprep.subr.bf16.mxu0 %v1945_v17 }
  0x4c   : > { %577 = vmatpush1.bf16.msra.mxu0 %v1943_v18  ;;  %v737_v18 = vsel %vm735_vm4, %v2280_v33, 0 }
  0x4d   : > { %578 = vmatprep.subr.bf16.mxu0 %v1948_v19  ;;  %1752 = vmatpush3.bf16.msra.mxu1 %v737_v18 }
  0x4e   : > { %1777 = vmatprep.subr.bf16.mxu1 %v2054_v1 }
  0x50   : > { %579 = vmatpush1.bf16.msra.mxu0 %v1946_v20 }
  0x51   : > { %580 = vmatprep.subr.bf16.mxu0 %v1951_v21 }
  0x54   : > { %581 = vmatpush1.bf16.msra.mxu0 %v1949_v22 }
  0x55   : > { %1757 = vmatprep.subr.bf16.mxu0 %v2054_v1 }
  0xae   : > { %v611_v43 = vpop.permute.xlu0 %610 }
  0xb3   : > { %v616_v54 = vpop.permute.xlu0 %615 }
 0x10a   : > { %v451_v27 = vpop.f32.mrb[0].mxu0 }
 0x10b   : > { %v452_v28 = vadd.f32 %v1657_v26, %v451_v27  ;;  %v1749_v29 = vpop.f32.mrb[1].mxu0  ;;  %v1952_v26 = vld [vmem:[%s2502_s6] sm:$0xff]  }
 0x10c   : > { %v454_v30 = vpop.f32.mrb[2].mxu0 }
 0x10d   : > { %v2272_v31 = vpack.c.bf16 %v452_v28, %v452_v28  ;;  %v1750_v32 = vpop.f32.mrb[3].mxu0  ;;  %v1953_v30 = vld [vmem:[%s2502_s6 + $0x8] sm:$0xff]  }
 0x10f   : > { %599 = vmatmul.mubr.bf16.vlgmr.msra.gmra.mrb[4].mxu0 %v2272_v31 }
 0x110   : > { %1773 = vmatprep.mubr.msk.bf16.mxu0 %vm2055_vm0, %v2054_v1  ;;  %1758 = vmatpush3.bf16.msra.mxu0 %v1952_v26 }
 0x111   : > { %1759 = vmatprep.subr.bf16.mxu0 %v2054_v1 }
 0x114   : > { %1760 = vmatpush3.bf16.msra.mxu0 %v1953_v30 }
 0x115   : > { %1761 = vmatprep.subr.bf16.mxu0 %v2054_v1 }
 0x118   : > { %1762 = vmatpush3.bf16.msra.mxu0 %v1954_v37 }
 0x119   : > { %1763 = vmatprep.subr.bf16.mxu0 %v2054_v1 }
 0x1e2   : > { %v600_v47 = vpop.f32.mrb[4].mxu0 }
 0x1e3   : > { %v601_v50 = vadd.f32 %v600_v47, %v479_v44  ;;  %v2300_v51 = vpop.f32.mrb[5].mxu0  ;;  %v1956_v44 = vld [vmem:[%s2502_s6 + $0x20] sm:$0xff]   ;;  %v1959_v47 = vld [vmem:[%s2502_s6 + $0x38] sm:$0xff]  }
 0x1e4   : > { %v604_v53 = vpop.f32.mrb[6].mxu0 }
 0x1e5   : > { %v605_v56 = vpop.f32.mrb[7].mxu0  ;;  %v613_v57 = vmul.f32 %v611_v43, %v601_v50  ;;  %v1955_v43 = vld [vmem:[%s2502_s6 + $0x18] sm:$0xff]  }
 0x1e6   : > { %1764 = vmatpush3.bf16.msra.mxu0 %v1955_v43 }
 0x1e7   : > { %v2304_v59 = vadd.f32 %v616_v54, %v613_v57  ;;  %1765 = vmatprep.subr.bf16.mxu0 %v2054_v1  ;;  %v482_v57 = vsub.s32 1, %v2285_v38 }
 0x1e9   : > { %v669_v62 = vsel %vm668_vm7, %v2304_v59, -1e+30  ;;  %v636_v63 = vsel %vm635_vm8, %v2304_v59, -1e+30  ;;  %v647_v4 = vsel %vm646_vm10, %v2304_v59, -1e+30  ;;  %v483_v58 = vrot.slane %v2293_v41, %v482_v57 }
 0x1ea   : > { %670 = vmax.xlane.f32.xlu0 %v669_v62  ;;  %637 = vmax.xlane.f32.xlu1 %v636_v63  ;;  %v658_v8 = vsel %vm657_vm12, %v2304_v59, -1e+30  ;;  %v680_v11 = vsel %vm679_vm14, %v2304_v59, -1e+30  ;;  %v691_v14 = vsel %vm690_vm1, %v2304_v59, -1e+30 }
 0x1eb   : > { %v702_v16 = vsel %vm701_vm2, %v2304_v59, -1e+30  ;;  %v713_v17 = vsel %vm712_vm3, %v2304_v59, -1e+30  ;;  %vm720_vm7 = vcmask 23552   ;;  %vm722_vm8 = vcmask 31744   ;;  %1766 = vmatpush3.bf16.msra.mxu0 %v1956_v44 }
 0x1ec   : > { %vm726_vm10 = vcmask 48128   ;;  %vm731_vm12 = vcmask 64512   ;;  %1767 = vmatprep.subr.bf16.mxu0 %v2054_v1  ;;  %v603_v60 = vadd.f32 %v2300_v51, %v483_v58 }
 0x1ee   : > { %648 = vmax.xlane.f32.xlu1 %v647_v4  ;;  %v1679_v61 = vmul.f32 -1.442695, %v603_v60 }
 0x1ef   : > { %1768 = vmatpush3.bf16.msra.mxu0 %v1957_v45 }
 0x1f0   : > { %1769 = vmatprep.subr.bf16.mxu0 %v2054_v1 }
 0x1f2   : > { %659 = vmax.xlane.f32.xlu1 %v658_v8 }
 0x1f3   : > { %1770 = vmatpush3.bf16.msra.mxu0 %v1958_v46 }
 0x1f4   : > { %1771 = vmatprep.subr.bf16.mxu0 %v2054_v1 }
 0x1f6   : > { %681 = vmax.xlane.f32.xlu1 %v680_v11 }
 0x1f7   : > { %1772 = vmatpush3.bf16.msra.mxu0 %v1959_v47 }
 0x1fa   : > { %692 = vmax.xlane.f32.xlu1 %v691_v14 }
 0x1fe   : > { %703 = vmax.xlane.f32.xlu1 %v702_v16 }
 0x200   : > { %1081 = vrot.lane.b32.xlu0 %v2272_v31, %s2058_s29 }
 0x202   : > { %714 = vmax.xlane.f32.xlu1 %v713_v17 }
 0x213   : > { %944 = vrot.lane.b32.xlu1 %v2272_v31, %s2059_s30 }
 0x21e   : > { %1013 = vxpose.xlu0.c.b16.start.end [1/1] (short) (narrow) %v2272_v31, 16 }
 0x227   : > { %1303 = vrot.lane.b32.xlu0 %v2272_v31, %s2507_s11  ;;  %s2062_s11 = smov 64  }
 0x277   : > { %v638_v19 = vpop.xlane.xlu1 %637  ;;  %v671_v27 = vpop.xlane.xlu0 %670 }
 0x27b   : > { %v649_v20 = vpop.xlane.xlu1 %648  ;;  %v1082_v13 = vpop.permute.xlu0 %1081 }
 0x27c   : > { %v717_v24 = vsel %vm716_vm5, %v638_v19, %v649_v20 }
 0x27f   : > { %v660_v21 = vpop.xlane.xlu1 %659 }
 0x280   : > { %v719_v25 = vsel %vm718_vm6, %v717_v24, %v660_v21 }
 0x281   : > { %v721_v29 = vsel %vm720_vm7, %v719_v25, %v671_v27 }
 0x283   : > { %v682_v22 = vpop.xlane.xlu1 %681 }
 0x284   : > { %v723_v32 = vsel %vm722_vm8, %v721_v29, %v682_v22  ;;  %v1021_v14 = vpop.trf.xlu0 }
 0x287   : > { %v693_v23 = vpop.xlane.xlu1 %692 }
 0x288   : > { %v725_v33 = vsel %vm724_vm9, %v723_v32, %v693_v23 }
 0x28b   : > { %v704_v28 = vpop.xlane.xlu1 %703 }
 0x28c   : > { %v727_v34 = vsel %vm726_vm10, %v725_v33, %v704_v28 }
 0x28f   : > { %v715_v35 = vpop.xlane.xlu1 %714 }
 0x290   : > { %v729_v36 = vsel %vm728_vm11, %v727_v34, %v715_v35 }
 0x291   : > { %v730_v39 = vpack.c.bf16 %v729_v36, %v729_v36 }
 0x293   : > { %1754 = vmatmul.mubr.msk.bf16.vlgmr.msra.gmra.mrb[0].mxu1 %vm731_vm12, %v730_v39  ;;  %v945_v42 = vpop.permute.xlu1 %944 }
 0x294   : > { %947 = vxpose.xlu1.c.b16.start.end [1/1] (short) (narrow) %v945_v42, 16  ;;  %1778 = vmatpush3.bf16.msra.mxu1 %v737_v18 }
 0x295   : > { %1779 = vmatprep.mubr.msk.bf16.mxu1 %vm2055_vm0, %v2054_v1  ;;  %1783 = vmatprep.subr.bf16.mxu1 %v2054_v1 }
 0x298   : > { %1155 = vrot.lane.b32.xlu1 %v2272_v31, %s2061_s12 }
 0x299   : > { %v1304_v15 = vpop.permute.xlu0 %1303 }
 0x2fa   : > { %v955_v11 = vpop.trf.xlu1 }
 0x30a   : > { %v1156_v12 = vpop.permute.xlu1 %1155 }
 0x366   : > { %v773_v48 = vpop.f32.mrb[0].mxu1 }
 0x367   : > { %v779_v49 = vsub.f32 %v2304_v59, %v773_v48  ;;  %v1755_v50 = vpop.f32.mrb[1].mxu1 }
 0x368   : > { %v776_v52 = vpop.f32.mrb[2].mxu1 }
 0x369   : > { %v780_v53 = vmul.f32 1.442695, %v779_v49  ;;  %v1756_v54 = vpop.f32.mrb[3].mxu1 }
 0x36b   : > { %1960 = vpow2.f32 %v780_v53 }
 0x36c   : > { %1962 = vpow2.f32 %v1679_v61 }
 0x375   : > { %v1961_v55 = vpop.eup %1960 }
 0x376   : > { %v782_v56 = vpack.c.bf16 %v1961_v55, %v1961_v55  ;;  %v1963_v62 = vpop.eup %1962 }
 0x377   : > { %v622_v63 = vadd.f32 1.0, %v1963_v62 }
 0x378   : > { %1774 = vmatmul.mubr.bf16.vlgmr.msra.gmra.mrb[8].mxu0 %v782_v56 }
 0x379   : > { %1964 = vrcp.f32 %v622_v63 }
 0x383   : > { %v1965_v4 = vpop.eup %1964 }
 0x44b   : > { %v881_v59 = vpop.f32.mrb[8].mxu0 }
 0x44c   : > { %1966 = vrcp.f32 %v881_v59  ;;  %v1775_v0 = vpop.f32.mrb[9].mxu0 }
 0x44d   : > { %v884_v2 = vpop.f32.mrb[10].mxu0 }
 0x44e   : > { %v1776_v3 = vpop.f32.mrb[11].mxu0 }
 0x44f   : > { %v1526_v3 = vld [vmem:[%s2501_s5 + $0x8] sm:$0xff] }
 0x456   : > { %v1967_v5 = vpop.eup %1966 }
 0x457   : > { %v888_v6 = vmul.f32 %v1967_v5, %v1965_v4 }
 0x459   : > { %v889_v7 = vpack.c.bf16 %v888_v6, %v888_v6 }
 0x45b   : > { %1780 = vmatmul.mubr.msk.bf16.vlgmr.msra.gmra.mrb[4].mxu1 %vm731_vm12, %v889_v7 }
 0x45c   : > { %1785 = vmatprep.mubr.msk.bf16.mxu1 %vm2055_vm0, %v2054_v1 }
 0x52e   : > { %v927_v38 = vpop.f32.mrb[4].mxu1 }
 0x52f   : > { %v933_v41 = vmul.f32 %v1961_v55, %v927_v38  ;;  %v1781_v51 = vpop.f32.mrb[5].mxu1 }
 0x530   : > { %v930_v8 = vpop.f32.mrb[6].mxu1 }
 0x531   : > { %v934_v9 = vpack.c.bf16 %v933_v41, %v933_v41  ;;  %v1782_v10 = vpop.f32.mrb[7].mxu1 }
 0x533   : > { %1100 = vrot.lane.b32.xlu0 %v934_v9, %s2058_s29  ;;  %964 = vrot.lane.b32.xlu1 %v934_v9, %s2059_s30  ;;  %v1033_v18 = vsel %vm735_vm4, %v934_v9, 0  ;;  %v935_v21 = vunpack.c.l.bf16 %v934_v9 }
 0x535   : > { %v936_v22 = vrot.slane %v935_v21, 4 }
 0x537   : > { %v937_v24 = vadd.f32 %v936_v22, %v935_v21 }
 0x539   : > { %v938_v27 = vrot.slane %v937_v24, 2 }
 0x53b   : > { %v939_v30 = vadd.f32 %v938_v27, %v937_v24 }
 0x53d   : > { %v940_v33 = vrot.slane %v939_v30, 1 }
 0x53f   : > { %v941_v35 = vadd.f32 %v940_v33, %v939_v30 }
 0x551   : > { %1158 = vxpose.xlu0.c.b16.start.end [1/1] (short) (narrow) %v1156_v12, 16 }
 0x556   : > { %1084 = vxpose.xlu1.c.b16.start.end [1/1] (short) (narrow) %v1082_v13, 16 }
 0x55a   : > { %1229 = vrot.lane.b32.xlu1 %v2272_v31, %s2062_s11  ;;  %1248 = vrot.lane.b32.xlu0 %v934_v9, %s2062_s11 }
 0x55e   : > { %1377 = vrot.lane.b32.xlu1 %v2272_v31, %s2063_s18  ;;  %1451 = vrot.lane.b32.xlu0 %v2272_v31, %s2064_s20 }
 0x562   : > { %1174 = vrot.lane.b32.xlu1 %v934_v9, %s2061_s12  ;;  %1396 = vrot.lane.b32.xlu0 %v934_v9, %s2063_s18 }
 0x580   : > { %1306 = vxpose.xlu0.c.b16.start.end [1/1] (short) (narrow) %v1304_v15, 16 }
 0x5a5   : > { %v965_v16 = vpop.permute.xlu1 %964  ;;  %v1101_v31 = vpop.permute.xlu0 %1100 }
 0x5a6   : > { %v970_v17 = vsel %vm735_vm4, %v965_v16, 0  ;;  %v1106_v19 = vsel %vm735_vm4, %v1101_v31, 0 }
 0x5a7   : > { %1784 = vmatpush3.bf16.msra.mxu1 %v970_v17 }
 0x5a8   : > { %1789 = vmatprep.subr.bf16.mxu1 %v2054_v1 }
 0x5aa   : > { %1786 = vmatmul.mubr.msk.bf16.vlgmr.msra.gmra.mrb[8].mxu1 %vm731_vm12, %v955_v11 }
 0x5ab   : > { %1790 = vmatpush3.bf16.msra.mxu1 %v1033_v18  ;;  %1791 = vmatprep.mubr.msk.bf16.mxu1 %vm2055_vm0, %v2054_v1 }
 0x5ac   : > { %1795 = vmatprep.subr.bf16.mxu1 %v2054_v1 }
 0x5b6   : > { %1792 = vmatmul.mubr.msk.bf16.vlgmr.msra.gmra.mrb[8].mxu1 %vm731_vm12, %v1021_v14 }
 0x5b7   : > { %1796 = vmatpush3.bf16.msra.mxu1 %v1106_v19  ;;  %1797 = vmatprep.mubr.msk.bf16.mxu1 %vm2055_vm0, %v2054_v1  ;;  %v1166_v23 = vpop.trf.xlu0 }
 0x5b8   : > { %1801 = vmatprep.subr.bf16.mxu1 %v2054_v1 }
 0x5bc   : > { %v1092_v20 = vpop.trf.xlu1 }
 0x5c2   : > { %1798 = vmatmul.mubr.msk.bf16.vlgmr.msra.gmra.mrb[8].mxu1 %vm731_vm12, %v1092_v20  ;;  %v1552_v20 = vstv %s1551_s28  ;;  %s2065_s28 = smov [#allocation5]  }
 0x5c3   : > { %1803 = vmatprep.mubr.msk.bf16.mxu1 %vm2055_vm0, %v2054_v1 }
 0x5cc   : > { %v1249_v25 = vpop.permute.xlu0 %1248  ;;  %v1230_v26 = vpop.permute.xlu1 %1229 }
 0x5cd   : > { %1232 = vxpose.xlu1.c.b16.start.end [1/1] (short) (narrow) %v1230_v26, 16  ;;  %v1254_v36 = vsel %vm735_vm4, %v1249_v25, 0 }
 0x5d0   : > { %v1452_v28 = vpop.permute.xlu0 %1451  ;;  %v1378_v29 = vpop.permute.xlu1 %1377 }
 0x5d1   : > { %1454 = vxpose.xlu0.c.b16.start.end [1/1] (short) (narrow) %v1452_v28, 16  ;;  %1322 = vrot.lane.b32.xlu1 %v934_v9, %s2512_s21 }
 0x5d4   : > { %v1175_v32 = vpop.permute.xlu1 %1174  ;;  %v1397_v39 = vpop.permute.xlu0 %1396 }
 0x5d5   : > { %v1180_v34 = vsel %vm735_vm4, %v1175_v32, 0  ;;  %1470 = vrot.lane.b32.xlu1 %v934_v9, %s2064_s20  ;;  %v1402_v45 = vsel %vm735_vm4, %v1397_v39, 0 }
 0x5d6   : > { %1802 = vmatpush3.bf16.msra.mxu1 %v1180_v34 }
 0x5d7   : > { %1807 = vmatprep.subr.bf16.mxu1 %v2054_v1 }
 0x5d9   : > { %1804 = vmatmul.mubr.msk.bf16.vlgmr.msra.gmra.mrb[8].mxu1 %vm731_vm12, %v1166_v23  ;;  %v1556_v23 = vstv %s1698_s27  ;;  %s1989_s27 = sshll.u32 %s2065_s28, 4  ;;  %s1990_s27 = int_to_ptr.vmem [resolvable:$false] %s1989_s27 }
 0x5da   : > { %1077 = vrot.lane.b32.xlu0 %v941_v35, %s2059_s30  ;;  %1808 = vmatpush3.bf16.msra.mxu1 %v1254_v36 }
 0x5db   : > { %1809 = vmatprep.mubr.msk.bf16.mxu1 %vm2055_vm0, %v2054_v1  ;;  %1813 = vmatprep.subr.bf16.mxu1 %v2054_v1 }
 0x5de   : > { %1151 = vrot.lane.b32.xlu0 %v941_v35, %s2058_s29 }
 0x5e2   : > { %1225 = vrot.lane.b32.xlu0 %v941_v35, %s2061_s12 }
 0x5e6   : > { %1299 = vrot.lane.b32.xlu0 %v941_v35, %s2062_s11  ;;  %v1314_v44 = vpop.trf.xlu0  ;;  %s1655_s11 = sshll.u32 %s362_s26, 4 }
 0x5ea   : > { %1373 = vrot.lane.b32.xlu0 %v941_v35, %s2512_s21 }
 0x5ee   : > { %1521 = vrot.lane.b32.xlu0 %v941_v35, %s2064_s20  ;;  %s364_s20 = scalar_lea.vmem [#allocation5], %s1655_s11  ;;  %s1991_s11 = scalar_lea.vmem %s1990_s27, 512 }
 0x5ef   : > { %s1575_s21 = sshll.u32 %s364_s20, 4  ;;  %s2451_s21 = int_to_ptr.vmem [resolvable:$true] %s1575_s21 }
 0x5f0   : > { %s1985_s25 = scalar_lea.vmem %s2451_s21, 256  ;;  %p1992_p13 = scmp.lt.s32.totalorder %s2451_s21, %s1990_s27 }
 0x5f1   : > { %p1986_p10 = scmp.ne.s32.totalorder %s2451_s21, %s1985_s25  ;;  %p1993_p0 = scmp.lt.s32.totalorder %s1991_s11, %s1985_s25 }
 0x5f3   : > { %p1987_p11 = pnand %p1986_p10, %p2161_p5  ;;  %p1994_p1 = por %p1993_p0, %p1992_p13 }
 0x5f5   : > { %p1988_p12 = pneg %p1987_p11 }
 0x5f7   : > { %p1995_p2 = pnand %p1994_p1, %p1988_p12 }
 0x5f8   : > { %1380 = vxpose.xlu1.c.b16.start.end [1/1] (short) (narrow) %v1378_v29, 16 }
 0x5fc   : > { %1447 = vrot.lane.b32.xlu1 %v941_v35, %s2063_s18  ;;  %s1704_s18 = sshll.u32 %s2144_s17, 8  ;;  %s2455_s17 = scalar_lea.sflag [#allocation3], %s362_s26 }
 0x5fd   : > { %s2449_s12 = scalar_lea.hbm %s2506_s10, %s1704_s18 }
 0x633   : > { %v1240_v37 = vpop.trf.xlu1 }
 0x634   : > { %1810 = vmatmul.mubr.msk.bf16.vlgmr.msra.gmra.mrb[8].mxu1 %vm731_vm12, %v1240_v37 }
 0x635   : > { %1815 = vmatprep.mubr.msk.bf16.mxu1 %vm2055_vm0, %v2054_v1 }
 0x637   : > { %v1462_v49 = vpop.trf.xlu0 }
 0x643   : > { %v1323_v42 = vpop.permute.xlu1 %1322 }
 0x644   : > { %v1328_v43 = vsel %vm735_vm4, %v1323_v42, 0 }
 0x645   : > { %1814 = vmatpush3.bf16.msra.mxu1 %v1328_v43 }
 0x646   : > { %1819 = vmatprep.subr.bf16.mxu1 %v2054_v1 }
 0x647   : > { %v1471_v46 = vpop.permute.xlu1 %1470 }
 0x648   : > { %1816 = vmatmul.mubr.msk.bf16.vlgmr.msra.gmra.mrb[8].mxu1 %vm731_vm12, %v1314_v44  ;;  %v1476_v48 = vsel %vm735_vm4, %v1471_v46, 0 }
 0x649   : > { %1820 = vmatpush3.bf16.msra.mxu1 %v1402_v45  ;;  %1821 = vmatprep.mubr.msk.bf16.mxu1 %vm2055_vm0, %v2054_v1 }
 0x64a   : > { %1825 = vmatprep.subr.bf16.mxu1 %v2054_v1 }
 0x64c   : > { %v1078_v50 = vpop.permute.xlu0 %1077 }
 0x64d   : > { %v1080_v55 = vadd.f32 %v1078_v50, %v941_v35 }
 0x650   : > { %v1152_v52 = vpop.permute.xlu0 %1151 }
 0x651   : > { %v1154_v56 = vadd.f32 %v1152_v52, %v1080_v55 }
 0x654   : > { %v1226_v53 = vpop.permute.xlu0 %1225 }
 0x655   : > { %v1228_v57 = vadd.f32 %v1226_v53, %v1154_v56 }
 0x658   : > { %v1300_v54 = vpop.permute.xlu0 %1299 }
 0x659   : > { %v1302_v60 = vadd.f32 %v1300_v54, %v1228_v57 }
 0x65c   : > { %v1374_v58 = vpop.permute.xlu0 %1373 }
 0x65d   : > { %v1376_v62 = vadd.f32 %v1374_v58, %v1302_v60 }
 0x65e   : > { %v1388_v47 = vpop.trf.xlu1 }
 0x65f   : > { %1822 = vmatmul.mubr.msk.bf16.vlgmr.msra.gmra.mrb[8].mxu1 %vm731_vm12, %v1388_v47 }
 0x660   : > { %1826 = vmatpush3.bf16.msra.mxu1 %v1476_v48  ;;  %1827 = vmatprep.mubr.msk.bf16.mxu1 %vm2055_vm0, %v2054_v1  ;;  %v1522_v59 = vpop.permute.xlu0 %1521  ;;  %v1525_v1 = vld [vmem:[%s2501_s5] sm:$0xff]  ;;  %vm1537_vm0 = vcmask 130048  }
 0x66b   : > { %1828 = vmatmul.mubr.msk.bf16.vlgmr.msra.gmra.mrb[8].mxu1 %vm731_vm12, %v1462_v49 }
 0x66e   : > { %v1448_v61 = vpop.permute.xlu1 %1447 }
 0x66f   : > { %v1450_v63 = vadd.f32 %v1448_v61, %v1376_v62 }
 0x671   : > { %v1524_v0 = vadd.f32 %v1522_v59, %v1450_v63 }
 0x673   : > { %v1530_v2 = vrot.slane %v1524_v0, %v2288_v40 }
 0x675   : > { %v1531_v4 = vmul.f32 %v1530_v2, %v1525_v1  ;;  %v1532_v38 = vmul.f32 %v1530_v2, %v1526_v3 }
 0x73e   : > { %v1512_v5 = vpop.f32.mrb[8].mxu1 }
 0x73f   : > { %v1533_v6 = vsub.f32 %v1512_v5, %v1531_v4  ;;  %v1829_v7 = vpop.f32.mrb[9].mxu1 }
 0x740   : > { %v1515_v41 = vpop.f32.mrb[10].mxu1 }
 0x741   : > { %v1535_v51 = vand.u32 2147483647, %v1533_v6  ;;  %v1534_v8 = vsub.f32 %v1515_v41, %v1532_v38  ;;  %v1830_v9 = vpop.f32.mrb[11].mxu1 }
 0x743   : > { %v1536_v40 = vand.u32 2147483647, %v1534_v8  ;;  %v1538_v10 = vsel %vm1537_vm0, %v1535_v51, 0.0 }
 0x745   : > { %v1539_v11 = vsel %vm1537_vm0, %v1536_v40, 0.0 }
 0x746   : > { %v1540_v12 = vadd.f32 %v1539_v11, %v1538_v10 }
 0x748   : > { %v1541_v13 = vrot.slane %v1540_v12, 4 }
 0x74a   : > { %v1542_v14 = vadd.f32 %v1541_v13, %v1540_v12 }
 0x74c   : > { %v1543_v15 = vrot.slane %v1542_v14, 2 }
 0x74e   : > { %v1544_v16 = vadd.f32 %v1543_v15, %v1542_v14 }
 0x750   : > { %v1545_v17 = vrot.slane %v1544_v16, 1 }
 0x752   : > { %v1546_v18 = vadd.f32 %v1545_v17, %v1544_v16 }
 0x754   : > { %v1547_v31 = vmax.f32 %v1546_v18, 1e-12 }
 0x756   : > { %1968 = vrcp.f32 %v1547_v31 }
 0x760   : > { %v1969_v19 = vpop.eup %1968 }
 0x761   : > { %v1549_v21 = vmul.f32 %v1969_v19, %v1533_v6  ;;  %v1550_v22 = vmul.f32 %v1969_v19, %v1534_v8 }
 0x763   : > { %v1553_v24 = vmul.f32 %v1552_v20, %v1549_v21  ;;  %v1554_v25 = vmul.f32 %v1552_v20, %v1550_v22 }
 0x765   : > { %v1557_v26 = vadd.f32 %v1556_v23, %v1553_v24  ;;  %v1558_v27 = vadd.f32 %v1556_v23, %v1554_v25 }
 0x767   : > { %1560 = vst.msk [vmem:[%s364_s20 + $0x8] sm:$0xff] %vm1537_vm0, %v1558_v27  ;;  %1559 = vst.msk [vmem:[%s364_s20] sm:$0xff] %vm1537_vm0, %v1557_v26 }
 0x768   : > { %1998 = shalt.err (!%p1995_p2)
}
 0x769   : > { %s1999_s26 = scalar_lea.hbm %s2449_s12, 256  ;;  %s2003_s29 = scalar_lea.hbm %s2506_s10, 512 }
 0x76a   : > { %p2000_p3 = scmp.ne.s32.totalorder %s2449_s12, %s1999_s26  ;;  %p2004_p8 = scmp.lt.u32.totalorder %s2449_s12, %s2506_s10 }
 0x76b   : > { %p2005_p9 = scmp.lt.u32.totalorder %s2003_s29, %s1999_s26  ;;  %p2007_p11 = scmp.lt.u32.totalorder %s1999_s26, %s2449_s12 }
 0x76c   : > { %p2001_p4 = pnand %p2000_p3, %p2161_p5 }
 0x76d   : > { %p2006_p10 = por %p2005_p9, %p2004_p8 }
 0x76e   : > { %p2002_p7 = pneg %p2001_p4 }
 0x76f   : > { %p2008_p12 = por %p2007_p11, %p2006_p10 }
 0x771   : > { %p2009_p13 = pnand %p2008_p12, %p2002_p7 }
 0x773   : > { %2012 = shalt.err (!%p2009_p13)
}
 0x774   : > { %s2066_s25 = smov 128   ;;  %s2067_s27 = smov 8  }
 0x775   : > { %1863 = dma.vmem_to_hbm [thread:$0]  (%p2161_p5), %s2451_s21, 256, %s2449_s12, %s2455_s17, %s2066_s25, %s2066_s25, %s2067_s27  }
 0x776 PF: > { %p1875_p0 = scmp.ge.s32.totalorder %s2051_s16, 2  ;;  %s1590_s11 = sand.u32 1, %s2039_s13  }
 0x777   : > { %s1591_s26 = scalar_lea.sflag [#allocation3], %s1590_s11 }
 0x778   : > { %p1870_p1 = pnand %p1875_p0, %p2165_p6 }
 0x77a   : > { %2034 = dma.done.wait (!%p1870_p1), %s1591_s26, 256  }
 0x77b   : > { %2036 = vsyncadd (!%p1870_p1), %s1591_s26, 4294967040  ;;  %p21_p2 = scmp.ge.s32.totalorder %s2148_s19, 4   ;;  %s2513_s13 = smov %s2043_s14 }
 0x77c   : > { %s2514_s14 = smov %s2047_s15  ;;  %s2515_s15 = smov %s2159_s22 }
 0x77d   : > { %s2516_s16 = smov %s2148_s19  ;;  %23 = sbr.rel (!%p21_p2) target bundleno = 4 (0x4), region = 100 }
 0x784   :  { %1596 = vsyncpa [#allocation3], 1 }
 0x785   :  { %1598 = vsyncpa [#allocation3 + $0x1], 1 }
 0x786   :  { %1599 = vsyncpa [#allocation4], 1 }
 0x787   :  { %1601 = vsyncpa [#allocation4 + $0x1], 1 }

</bundles_post_ra>
